<compile_context>
chip_gen: v5e
topology: v5e:2x2
jax: 0.10.0
libtpu: 0.0.40
codegen_flags: <defaults>
</compile_context>

<pallas_src>
import jax
import jax.numpy as jnp
from jax.experimental import pallas as pl
from jax.experimental.pallas import tpu as pltpu

_LANE = 128


def _round_up(n, m):
    return ((n + m - 1) // m) * m


def _sublane(dtype):
    # 8 rows for f32, 16 for bf16, 32 for int8/fp8.
    return max(8, 32 // jnp.dtype(dtype).itemsize)


def _vmem_capacity_bytes():
    try:
        return int(pltpu.get_tpu_info().vmem_capacity_bytes)
    except Exception:
        return 128 * 1024 * 1024  # v5e/v6e default if the query is unavailable


# ---------------------------------------------------------------------------
# Kernels
# ---------------------------------------------------------------------------

def _mix_reduce_kernel(x_ref, w_ref, o_ref):
    # General path: x (tm, H) * fused weight row (1, H), lane reduce -> (tm, 1).
    # VPU multiply + XLU reduce; accumulate in f32.
    prod = x_ref[...].astype(jnp.float32) * w_ref[...].astype(jnp.float32)
    o_ref[...] = jnp.sum(prod, axis=-1, keepdims=True).astype(o_ref.dtype)


def _mix_packed_kernel(x_ref, w_ref, o_ref):
    # Lane-packed path: x (tm, k*H) @ block-diagonal weight (k*H, k) -> (tm, k)
    # on the MXU (idle otherwise), f32 accumulation.
    o_ref[...] = jnp.dot(
        x_ref[...], w_ref[...], preferred_element_type=jnp.float32
    ).astype(o_ref.dtype)


# ---------------------------------------------------------------------------
# Tiling / launch helpers
# ---------------------------------------------------------------------------

def _choose_tile(rows, x_cols, x_itemsize, out_cols, out_itemsize, sublane):
    vmem_cap = _vmem_capacity_bytes()
    small_vmem = vmem_cap < 96 * 1024 * 1024          # v7x-class (64 MiB / TC)
    bufs_x = 3 if small_vmem else 2                   # Buffered(3) on v7x
    # ~48 MiB budget on v7x (headroom for compiler scratch), ~64 MiB elsewhere.
    budget = min(vmem_cap * 3 // 4, 64 * 1024 * 1024)

    # Count VMEM rows at their lane-padded width, including the output block.
    row_x_bytes = _round_up(max(x_cols, 1), _LANE) * x_itemsize
    row_o_bytes = _round_up(max(out_cols, 1), _LANE) * out_itemsize
    denom = bufs_x * row_x_bytes + 2 * row_o_bytes

    tm = budget // denom
    tm = max(sublane, (tm // sublane) * sublane)      # dtype sublane multiple
    tm = min(tm, _round_up(rows, sublane))            # no point exceeding rows

    footprint = bufs_x * tm * row_x_bytes + 2 * tm * row_o_bytes + (1 << 20)
    vmem_limit = min(vmem_cap - (8 << 20),
                     max(32 << 20, footprint + (8 << 20)))
    return tm, int(vmem_limit), small_vmem


def _make_x_spec(block_shape, index_map, extra_buffering):
    # Triple-buffer the streamed x tiles on small-VMEM / high-BW chips (v7x).
    if extra_buffering and hasattr(pl, "Buffered"):
        try:
            return pl.BlockSpec(block_shape, index_map,
                                pipeline_mode=pl.Buffered(3))
        except TypeError:
            pass
    return pl.BlockSpec(block_shape, index_map)


def _launch(kernel, x2d, w, n_out, tile_rows=None):
    rows, cols = x2d.shape
    itemsize = jnp.dtype(x2d.dtype).itemsize
    sublane = _sublane(x2d.dtype)
    tm, vmem_limit, small_vmem = _choose_tile(
        rows, cols, itemsize, n_out, itemsize, sublane)
    if tile_rows is not None:                          # test/override hook
        tm = max(sublane, _round_up(tile_rows, sublane))
    n_tiles = pl.cdiv(rows, tm)                        # ragged last block OK

    return pl.pallas_call(
        kernel,
        out_shape=jax.ShapeDtypeStruct((rows, n_out), x2d.dtype),
        grid=(n_tiles,),
        in_specs=[
            _make_x_spec((tm, cols), lambda i: (i, 0), small_vmem),
            pl.BlockSpec(w.shape, lambda i: (0, 0)),   # small weight, resident
        ],
        out_specs=pl.BlockSpec((tm, n_out), lambda i: (i, 0)),
        compiler_params=pltpu.CompilerParams(
            dimension_semantics=("parallel",),         # megacore shard on v7x
            vmem_limit_bytes=vmem_limit,
        ),
    )(x2d, w)


# ---------------------------------------------------------------------------
# Public forward
# ---------------------------------------------------------------------------

def mix_forward_pallas(x, w_L, w_N, tile_rows=None):
    """Pallas path: x [B, H], w_L/w_N [H//2, 1] -> [B, 1]."""
    B, H = x.shape
    half = H // 2
    assert w_L.shape == (half, 1) and w_N.shape == (half, 1)

    # x[:, :H/2] @ w_L + x[:, H/2:] @ w_N == x @ concat(w_L, w_N)
    # (under jit by the caller this concat is hoisted/fused; it is negligible).
    w_full = jnp.concatenate([w_L, w_N], axis=0).astype(x.dtype)   # (H, 1)

    # Lane packing for small H: fold k = 128 // H batch rows into one full
    # 128-lane row (pure reshape view, no HBM copy) and contract with a
    # block-diagonal (k*H, k) weight on the MXU.
    k = _LANE // H if 0 < H < _LANE else 1
    if k > 1 and _LANE % H == 0 and B % k == 0 and B >= k:
        x_packed = x.reshape(B // k, k * H)
        eye_k = jnp.eye(k, dtype=x.dtype)
        w_bd = (eye_k[:, None, :] * w_full.reshape(1, H, 1)).reshape(k * H, k)
        out = _launch(_mix_packed_kernel, x_packed, w_bd, k, tile_rows)
        return out.reshape(B, 1)

    # General path: fused (1, H) weight row, VPU multiply + lane reduce.
    w_row = w_full.reshape(1, H)
    return _launch(_mix_reduce_kernel, x, w_row, 1, tile_rows)


def mix_forward(x, w_L, w_N, force_pallas=False):
    """Forward of Mix. Tiny problems (< 4 MiB of x) go to a fused XLA dot,
    where pallas_call launch overhead would dominate."""
    B, H = x.shape
    if not force_pallas and B * H * jnp.dtype(x.dtype).itemsize < (4 << 20):
        return x @ jnp.concatenate([w_L, w_N], axis=0).astype(x.dtype)
    return mix_forward_pallas(x, w_L, w_N)


# ---------------------------------------------------------------------------
# Self-test
# ---------------------------------------------------------------------------

if __name__ == "__main__":
    def ref(x, w_L, w_N):
        h = x.shape[1] // 2
        return x[:, :h] @ w_L + x[:, h:] @ w_N

    k0, k1, k2, k3, k4 = jax.random.split(jax.random.PRNGKey(0), 5)

    # Case 1: module-consistent toy shapes (batch=8, hidden_size=32).
    # Exercises the lane-packed MXU path (k = 128 // 32 = 4).
    B1, H1 = 8, 32
    x1 = jax.random.normal(k0, (B1, H1), dtype=jnp.float32)
    w_L1 = jnp.full((H1 // 2, 1), 0.5, dtype=jnp.float32)   # Mix fills consts
    w_N1 = jnp.full((H1 // 2, 1), -0.25, dtype=jnp.float32)
    out1 = jax.block_until_ready(mix_forward_pallas(x1, w_L1, w_N1))
    assert out1.shape == (B1, 1)
    assert jnp.allclose(out1, ref(x1, w_L1, w_N1), atol=1e-5, rtol=1e-5)

    # Case 2: batch not divisible by the pack factor -> general VPU-reduce
    # path, single ragged block (B=6 rows in an 8-row tile), no padding.
    B2, H2 = 6, 32
    x2 = jax.random.normal(k1, (B2, H2), dtype=jnp.float32)
    w_L2 = jax.random.normal(k2, (H2 // 2, 1), dtype=jnp.float32)
    w_N2 = jax.random.normal(k3, (H2 // 2, 1), dtype=jnp.float32)
    out2 = jax.block_until_ready(mix_forward_pallas(x2, w_L2, w_N2))
    assert out2.shape == (B2, 1)
    assert jnp.allclose(out2, ref(x2, w_L2, w_N2), atol=1e-5, rtol=1e-5)

    # Case 3: multi-tile grid with a ragged last block (B=20, tile 8 rows,
    # H=256 >= 128) -> verifies the no-pad ragged-block handling end to end.
    B3, H3 = 20, 256
    x3 = jax.random.normal(k4, (B3, H3), dtype=jnp.float32)
    w_L3 = jnp.full((H3 // 2, 1), 0.125, dtype=jnp.float32)
    w_N3 = jnp.full((H3 // 2, 1), -0.5, dtype=jnp.float32)
    out3 = jax.block_until_ready(
        mix_forward_pallas(x3, w_L3, w_N3, tile_rows=8))
    assert out3.shape == (B3, 1)
    assert jnp.allclose(out3, ref(x3, w_L3, w_N3), atol=1e-4, rtol=1e-4)

    print("KERNEL_OK")
</pallas_src>

<mosaic_0001>
module attributes {stable_mosaic.version = 11 : i64} {
  func.func @_mix_packed_kernel(%arg0: i32, %arg1: memref<8x128xf32, #tpu.memory_space<vmem>>, %arg2: memref<128x4xf32, #tpu.memory_space<vmem>>, %arg3: memref<8x4xf32, #tpu.memory_space<vmem>>) attributes {dimension_semantics = [#tpu.dimension_semantics<parallel>], iteration_bounds = array<i64: 1>, scalar_prefetch = 0 : i64, scratch_operands = 0 : i64, tpu.core_type = #tpu.core_type<tc>, window_params = [{transform_indices = @transform_0, window_bounds = array<i64: 8, 128>}, {pipeline_mode = #tpu.pipeline_mode<synchronous>, transform_indices = @transform_1, window_bounds = array<i64: 128, 4>}, {transform_indices = @transform_2, window_bounds = array<i64: 8, 4>}]} {
    %c0 = arith.constant 0 : index
    %c0_0 = arith.constant 0 : index
    %0 = vector.load %arg1[%c0, %c0_0] : memref<8x128xf32, #tpu.memory_space<vmem>>, vector<8x128xf32>
    %c0_1 = arith.constant 0 : index
    %c0_2 = arith.constant 0 : index
    %1 = vector.load %arg2[%c0_1, %c0_2] : memref<128x4xf32, #tpu.memory_space<vmem>>, vector<128x4xf32>
    %cst = arith.constant dense<0.000000e+00> : vector<8x4xf32>
    %2 = tpu.matmul %0, %1, %cst {dimension_numbers = #tpu.dot_dimension_numbers<[1], [0], [0], [1], [0, 0, 1, 1], [], []>} : vector<8x128xf32>, vector<128x4xf32>, vector<8x4xf32> -> vector<8x4xf32>
    %c0_3 = arith.constant 0 : index
    %c0_4 = arith.constant 0 : index
    %3 = vector.load %arg3[%c0_3, %c0_4] : memref<8x4xf32, #tpu.memory_space<vmem>>, vector<8x4xf32>
    tpu.vector_store %arg3[%c0_3, %c0_4], %2 {strides = array<i32>} : memref<8x4xf32, #tpu.memory_space<vmem>>, vector<8x4xf32>,
    return
  }
  func.func @transform_0(%arg0: i32) -> (i32, i32) {
    %c0_i32 = arith.constant 0 : i32
    %c0_i32_0 = arith.constant 0 : i32
    return %arg0, %c0_i32 : i32, i32
  }
  func.func @transform_1(%arg0: i32) -> (i32, i32) {
    %c0_i32 = arith.constant 0 : i32
    %c0_i32_0 = arith.constant 0 : i32
    %c0_i32_1 = arith.constant 0 : i32
    return %c0_i32, %c0_i32_0 : i32, i32
  }
  func.func @transform_2(%arg0: i32) -> (i32, i32) {
    %c0_i32 = arith.constant 0 : i32
    %c0_i32_0 = arith.constant 0 : i32
    return %arg0, %c0_i32 : i32, i32
  }
}

</mosaic_0001>

<bundles_post_ra>
// kernel: tpu_custom_call.1
= control target key start
LH: loop header
LB: loop body
LE: loop exit
PB: predicated region body
PF: predicated region fallthrough
CT: control target
= control target key end

     0   :  { %7 = vsyncpa [#allocation3], 0  ;;  %vm49_vm0 = vcmask 31744   ;;  %s170_s0 = inlined_call_operand.vmem [shape: f32[2,128], index: 0, kind: input, shape index: {}]   ;;  %s171_s1 = inlined_call_operand.vmem [shape: f32[128,4], index: 1, kind: input, shape index: {}]   ;;  %s172_s2 = inlined_call_operand.hbm [shape: f32[2,4], index: 2, kind: output, shape index: {}]  }
   0x1   :  { %v28_v0 = vld [vmem:[%s171_s1 + $0x78] sm:$0xff]  ;;  %v27_v1 = vld [vmem:[%s171_s1 + $0x70] sm:$0xff]  ;;  %v26_v2 = vld [vmem:[%s171_s1 + $0x68] sm:$0xff] }
   0x2   :  { %29 = vmatpush.msra.mxu0 %v28_v0  ;;  %v25_v3 = vld [vmem:[%s171_s1 + $0x60] sm:$0xff]  ;;  %v24_v4 = vld [vmem:[%s171_s1 + $0x58] sm:$0xff]  ;;  %v23_v5 = vld [vmem:[%s171_s1 + $0x50] sm:$0xff] }
   0x3   :  { %v22_v6 = vld [vmem:[%s171_s1 + $0x48] sm:$0xff]  ;;  %v21_v7 = vld [vmem:[%s171_s1 + $0x40] sm:$0xff]  ;;  %v20_v8 = vld [vmem:[%s171_s1 + $0x38] sm:$0xff] }
   0x4   :  { %30 = vmatpush.msra.mxu0 %v27_v1  ;;  %v19_v9 = vld [vmem:[%s171_s1 + $0x30] sm:$0xff]  ;;  %v18_v10 = vld [vmem:[%s171_s1 + $0x28] sm:$0xff]  ;;  %v17_v11 = vld [vmem:[%s171_s1 + $0x20] sm:$0xff] }
   0x5   :  { %v16_v12 = vld [vmem:[%s171_s1 + $0x18] sm:$0xff]  ;;  %v15_v13 = vld [vmem:[%s171_s1 + $0x10] sm:$0xff]  ;;  %v14_v14 = vld [vmem:[%s171_s1 + $0x8] sm:$0xff] }
   0x6   :  { %31 = vmatpush.msra.mxu0 %v26_v2  ;;  %v13_v15 = vld [vmem:[%s171_s1] sm:$0xff] }
   0x7   :  { %v12_v16 = vld [vmem:[%s170_s0] sm:$0xff] }
   0x8   :  { %32 = vmatpush.msra.mxu0 %v25_v3 }
   0xa   :  { %33 = vmatpush.msra.mxu0 %v24_v4 }
   0xc   :  { %34 = vmatpush.msra.mxu0 %v23_v5 }
   0xe   :  { %35 = vmatpush.msra.mxu0 %v22_v6 }
  0x10   :  { %36 = vmatpush.msra.mxu0 %v21_v7 }
  0x12   :  { %37 = vmatpush.msra.mxu0 %v20_v8 }
  0x14   :  { %38 = vmatpush.msra.mxu0 %v19_v9 }
  0x16   :  { %39 = vmatpush.msra.mxu0 %v18_v10 }
  0x18   :  { %40 = vmatpush.msra.mxu0 %v17_v11 }
  0x1a   :  { %41 = vmatpush.msra.mxu0 %v16_v12 }
  0x1c   :  { %42 = vmatpush.msra.mxu0 %v15_v13 }
  0x1e   :  { %43 = vmatpush.msra.mxu0 %v14_v14 }
  0x20   :  { %44 = vmatpush.msra.mxu0 %v13_v15 }
  0x21   :  { %45 = vmatmul.f32.vlgmr.msra.gmra.mxu0 %v12_v16 }
  0x9e   :  { %v46_v17 = vpop.f32.mrf.mxu0 }
  0x9f   :  { %50 = vst.msk [vmem:[#allocation2] sm:$0xff] %vm49_vm0, %v46_v17 }
  0xa0   :  { %54 = vsyncadd [#allocation3], 96  ;;  %s57_s17 = sshll.u32 %s172_s2, 4  ;;  %s98_s18 = smov [#allocation2]   ;;  %s58_s17 = int_to_ptr.hbm [resolvable:$true] %s57_s17 }
  0xa1   :  { %s55_s19 = sshll.u32 %s98_s18, 4  ;;  %s99_s1 = smov 32   ;;  %s56_s19 = int_to_ptr.vmem [resolvable:$true] %s55_s19 }
  0xa2   :  { %s100_s20 = smov 2  }
  0xa3   :  { %63 = dma.vmem_to_hbm [thread:$0]  %s56_s19, 32, %s58_s17, [#allocation3], %s99_s1, %s99_s1, %s100_s20  }
  0xa4   :  { %96 = dma.done.wait [#allocation3], 128  }
  0xa5   :  { %97 = vsyncadd [#allocation3], 4294967168 }
  0xa6   :  { %68 = vsyncpa [#allocation3], 1 }

</bundles_post_ra>
